<compile_context>
chip_gen: v5e
topology: v5e:2x2
jax: 0.10.0
libtpu: 0.0.40
codegen_flags: <defaults>
</compile_context>

<pallas_src>
import jax
import jax.numpy as jnp
from jax.experimental import pallas as pl
from jax.experimental.pallas import tpu as pltpu


def soft_attention_kernel(h_ref, whT_ref, wa_ref, p_ref, feats_ref, mask_ref, out_ref):
    # h_ref     : (TB, H)
    # whT_ref   : (H, E)
    # wa_ref    : (1, E)     lane-dense w_alpha weight vector
    # p_ref     : (TB, L, E)
    # feats_ref : (TB, L, D)
    # mask_ref  : (TB, L)    additive mask (0 / -1e9)
    # out_ref   : (TB, D)
    h = h_ref[...].astype(jnp.float32)                                   # (TB, H)
    whT = whT_ref[...].astype(jnp.float32)                               # (H, E)
    wh = jnp.dot(h, whT, preferred_element_type=jnp.float32)             # (TB, E)  MXU, M=TB

    a = jnp.tanh(wh[:, None, :] + p_ref[...].astype(jnp.float32))        # (TB, L, E)

    # w_alpha projection as VPU multiply + lane reduce (avoid an N=1 MXU matmul).
    wa = wa_ref[...].astype(jnp.float32)                                 # (1, E)
    logits = jnp.sum(a * wa, axis=-1)                                    # (TB, L)
    logits = logits + mask_ref[...].astype(jnp.float32)                  # (TB, L)

    # softmax over L (lane axis)
    m = jnp.max(logits, axis=-1, keepdims=True)                          # (TB, 1)
    e = jnp.exp(logits - m)                                              # (TB, L)
    inv = pl.reciprocal(jnp.sum(e, axis=-1, keepdims=True), approx=True) # (TB, 1)  EUP
    alpha = e * inv                                                      # (TB, L)

    # weighted sum over L: broadcast-multiply + sublane reduce (no M=1 matmul)
    feats = feats_ref[...].astype(jnp.float32)                           # (TB, L, D)
    att = jnp.sum(alpha[:, :, None] * feats, axis=1)                     # (TB, D)
    out_ref[...] = att.astype(out_ref.dtype)


def _pick_batch_tile(B, per_row_bytes, vmem_budget_bytes=16 * 1024 * 1024):
    """Largest batch tile that divides B and fits a conservative VMEM budget
    (budget is safe for v5e/v6e 128 MiB and v7x 64 MiB, incl. double-buffering)."""
    max_tb = max(1, vmem_budget_bytes // max(per_row_bytes, 1))
    for tb in (512, 256, 128, 64, 32, 16, 8):
        if tb <= max_tb and B % tb == 0:
            return tb
    return B  # small / irregular batch: a single tile covering the whole batch


def soft_attention(hidden_states, att_feats, p_att_feats, w_h, w_alpha, att_masks=None):
    """hidden_states [B,H], att_feats [B,L,D], p_att_feats [B,L,E],
    w_h [E,H] (torch Linear layout), w_alpha [1,E], att_masks [B,L] (additive)."""
    B, H = hidden_states.shape
    _, L, D = att_feats.shape
    E = w_h.shape[0]

    if att_masks is None:
        att_masks = jnp.zeros((B, L), dtype=jnp.float32)

    whT = jnp.transpose(w_h)        # (H, E)
    wa = w_alpha.reshape(1, E)      # (1, E) lane-dense

    # double-buffered per-batch-row VMEM footprint (f32 upper bound)
    per_row_bytes = 2 * (H + L * (E + D + 1) + 2 * D) * 4
    TB = _pick_batch_tile(B, per_row_bytes)
    grid = (B // TB,)

    out = pl.pallas_call(
        soft_attention_kernel,
        out_shape=jax.ShapeDtypeStruct((B, D), att_feats.dtype),
        grid_spec=pltpu.PrefetchScalarGridSpec(
            num_scalar_prefetch=0,
            grid=grid,
            in_specs=[
                pl.BlockSpec((TB, H), lambda b: (b, 0)),        # hidden_states
                pl.BlockSpec((H, E), lambda b: (0, 0)),         # W_h^T (resident)
                pl.BlockSpec((1, E), lambda b: (0, 0)),         # w_alpha (resident)
                pl.BlockSpec((TB, L, E), lambda b: (b, 0, 0)),  # p_att_feats
                pl.BlockSpec((TB, L, D), lambda b: (b, 0, 0)),  # att_feats
                pl.BlockSpec((TB, L), lambda b: (b, 0)),        # att_masks (lane-dense)
            ],
            out_specs=pl.BlockSpec((TB, D), lambda b: (b, 0)),
        ),
        compiler_params=pltpu.CompilerParams(
            dimension_semantics=("parallel",),
        ),
    )(hidden_states, whT, wa, p_att_feats, att_feats, att_masks)
    return out


def weight_norm_effective(v):
    # weight_norm with dim=0: w = g * v / ||v||_row ; at init g = ||v||_row => w == v.
    norm = jnp.sqrt(jnp.sum(v * v, axis=1, keepdims=True))
    return norm * v / norm


def reference(hidden_states, att_feats, p_att_feats, w_h, w_alpha, att_masks):
    wh = hidden_states @ w_h.T                      # (B, E)
    alpha = jnp.tanh(wh[:, None, :] + p_att_feats)  # (B, L, E)
    logit = jnp.squeeze(alpha @ w_alpha.T, -1)      # (B, L)
    logit = logit + att_masks
    a = jax.nn.softmax(logit, axis=-1)
    return jnp.einsum("bl,bld->bd", a, att_feats)


if __name__ == "__main__":
    B, H, E, L, D = 16, 32, 32, 8, 32
    key = jax.random.PRNGKey(0)
    k1, k2, k3, k4, k5 = jax.random.split(key, 5)

    hidden_states = jax.random.normal(k1, (B, H), dtype=jnp.float32)
    att_feats = jax.random.normal(k2, (B, L, D), dtype=jnp.float32)
    p_att_feats = jax.random.normal(k3, (B, L, E), dtype=jnp.float32)
    # additive masks: last two positions of batch 1 masked out
    att_masks = jnp.zeros((B, L), dtype=jnp.float32).at[1, -2:].set(-1e9)

    # deterministic parameter init (torch Linear-style [out, in]); weight_norm applied
    w_h = weight_norm_effective(jax.random.normal(k4, (E, H), dtype=jnp.float32) * 0.1)
    w_alpha = weight_norm_effective(jax.random.normal(k5, (1, E), dtype=jnp.float32) * 0.1)

    out = soft_attention(hidden_states, att_feats, p_att_feats, w_h, w_alpha, att_masks)
    out = jax.block_until_ready(out)

    ref = reference(hidden_states, att_feats, p_att_feats, w_h, w_alpha, att_masks)
    assert out.shape == (B, D)
    # tolerance loosened slightly for the approximate (EUP) reciprocal in softmax
    assert jnp.allclose(out, ref, atol=5e-3, rtol=5e-3), "mismatch vs reference"
    print("KERNEL_OK")
</pallas_src>

<mosaic_0001>
module attributes {stable_mosaic.version = 11 : i64} {
  func.func @soft_attention_kernel(%arg0: i32, %arg1: memref<16x32xf32, #tpu.memory_space<vmem>>, %arg2: memref<32x32xf32, #tpu.memory_space<vmem>>, %arg3: memref<1x32xf32, #tpu.memory_space<vmem>>, %arg4: memref<16x8x32xf32, #tpu.memory_space<vmem>>, %arg5: memref<16x8x32xf32, #tpu.memory_space<vmem>>, %arg6: memref<16x8xf32, #tpu.memory_space<vmem>>, %arg7: memref<16x32xf32, #tpu.memory_space<vmem>>) attributes {dimension_semantics = [#tpu.dimension_semantics<parallel>], iteration_bounds = array<i64: 1>, scalar_prefetch = 0 : i64, scratch_operands = 0 : i64, tpu.core_type = #tpu.core_type<tc>, window_params = [{transform_indices = @transform_0, window_bounds = array<i64: 16, 32>}, {pipeline_mode = #tpu.pipeline_mode<synchronous>, transform_indices = @transform_1, window_bounds = array<i64: 32, 32>}, {pipeline_mode = #tpu.pipeline_mode<synchronous>, transform_indices = @transform_2, window_bounds = array<i64: 1, 32>}, {transform_indices = @transform_3, window_bounds = array<i64: 16, 8, 32>}, {transform_indices = @transform_4, window_bounds = array<i64: 16, 8, 32>}, {transform_indices = @transform_5, window_bounds = array<i64: 16, 8>}, {transform_indices = @transform_6, window_bounds = array<i64: 16, 32>}]} {
    %c0 = arith.constant 0 : index
    %c0_0 = arith.constant 0 : index
    %0 = vector.load %arg1[%c0, %c0_0] : memref<16x32xf32, #tpu.memory_space<vmem>>, vector<16x32xf32>
    %c0_1 = arith.constant 0 : index
    %c0_2 = arith.constant 0 : index
    %1 = vector.load %arg2[%c0_1, %c0_2] : memref<32x32xf32, #tpu.memory_space<vmem>>, vector<32x32xf32>
    %cst = arith.constant dense<0.000000e+00> : vector<16x32xf32>
    %2 = tpu.matmul %0, %1, %cst {dimension_numbers = #tpu.dot_dimension_numbers<[1], [0], [0], [1], [0, 0, 1, 1], [], []>} : vector<16x32xf32>, vector<32x32xf32>, vector<16x32xf32> -> vector<16x32xf32>
    %3 = vector.shape_cast %2 : vector<16x32xf32> to vector<16x1x32xf32>
    %c0_3 = arith.constant 0 : index
    %c0_4 = arith.constant 0 : index
    %c0_5 = arith.constant 0 : index
    %4 = vector.load %arg4[%c0_3, %c0_4, %c0_5] : memref<16x8x32xf32, #tpu.memory_space<vmem>>, vector<16x8x32xf32>
    %5 = vector.broadcast %3 : vector<16x1x32xf32> to vector<16x8x32xf32>
    %6 = arith.addf %5, %4 : vector<16x8x32xf32>
    %7 = math.tanh %6 : vector<16x8x32xf32>
    %c0_6 = arith.constant 0 : index
    %c0_7 = arith.constant 0 : index
    %8 = vector.load %arg3[%c0_6, %c0_7] : memref<1x32xf32, #tpu.memory_space<vmem>>, vector<1x32xf32>
    %9 = vector.shape_cast %8 : vector<1x32xf32> to vector<1x1x32xf32>
    %10 = vector.broadcast %9 : vector<1x1x32xf32> to vector<16x8x32xf32>
    %11 = arith.mulf %7, %10 : vector<16x8x32xf32>
    %cst_8 = arith.constant dense<0.000000e+00> : vector<16x8xf32>
    %12 = vector.multi_reduction <add>, %11, %cst_8 [2] : vector<16x8x32xf32> to vector<16x8xf32>
    %c0_9 = arith.constant 0 : index
    %c0_10 = arith.constant 0 : index
    %13 = vector.load %arg6[%c0_9, %c0_10] : memref<16x8xf32, #tpu.memory_space<vmem>>, vector<16x8xf32>
    %14 = arith.addf %12, %13 : vector<16x8xf32>
    %cst_11 = arith.constant dense<0xFF800000> : vector<16xf32>
    %15 = vector.multi_reduction <maximumf>, %14, %cst_11 [1] : vector<16x8xf32> to vector<16xf32>
    %16 = vector.shape_cast %15 : vector<16xf32> to vector<16x1xf32>
    %17 = vector.broadcast %16 : vector<16x1xf32> to vector<16x8xf32>
    %18 = arith.subf %14, %17 : vector<16x8xf32>
    %19 = math.exp %18 : vector<16x8xf32>
    %cst_12 = arith.constant dense<0.000000e+00> : vector<16xf32>
    %20 = vector.multi_reduction <add>, %19, %cst_12 [1] : vector<16x8xf32> to vector<16xf32>
    %21 = vector.shape_cast %20 : vector<16xf32> to vector<16x1xf32>
    %22 = tpu.reciprocal %21 {approx = true} : vector<16x1xf32> -> vector<16x1xf32>
    %23 = vector.broadcast %22 : vector<16x1xf32> to vector<16x8xf32>
    %24 = arith.mulf %19, %23 : vector<16x8xf32>
    %c0_13 = arith.constant 0 : index
    %c0_14 = arith.constant 0 : index
    %c0_15 = arith.constant 0 : index
    %25 = vector.load %arg5[%c0_13, %c0_14, %c0_15] : memref<16x8x32xf32, #tpu.memory_space<vmem>>, vector<16x8x32xf32>
    %26 = vector.shape_cast %24 : vector<16x8xf32> to vector<16x8x1xf32>
    %27 = vector.broadcast %26 : vector<16x8x1xf32> to vector<16x8x32xf32>
    %28 = arith.mulf %27, %25 : vector<16x8x32xf32>
    %cst_16 = arith.constant dense<0.000000e+00> : vector<16x32xf32>
    %29 = vector.multi_reduction <add>, %28, %cst_16 [1] : vector<16x8x32xf32> to vector<16x32xf32>
    %c0_17 = arith.constant 0 : index
    %c0_18 = arith.constant 0 : index
    %30 = vector.load %arg7[%c0_17, %c0_18] : memref<16x32xf32, #tpu.memory_space<vmem>>, vector<16x32xf32>
    tpu.vector_store %arg7[%c0_17, %c0_18], %29 {strides = array<i32>} : memref<16x32xf32, #tpu.memory_space<vmem>>, vector<16x32xf32>,
    return
  }
  func.func @transform_0(%arg0: i32) -> (i32, i32) {
    %c0_i32 = arith.constant 0 : i32
    %c0_i32_0 = arith.constant 0 : i32
    return %arg0, %c0_i32 : i32, i32
  }
  func.func @transform_1(%arg0: i32) -> (i32, i32) {
    %c0_i32 = arith.constant 0 : i32
    %c0_i32_0 = arith.constant 0 : i32
    %c0_i32_1 = arith.constant 0 : i32
    return %c0_i32, %c0_i32_0 : i32, i32
  }
  func.func @transform_2(%arg0: i32) -> (i32, i32) {
    %c0_i32 = arith.constant 0 : i32
    %c0_i32_0 = arith.constant 0 : i32
    %c0_i32_1 = arith.constant 0 : i32
    return %c0_i32, %c0_i32_0 : i32, i32
  }
  func.func @transform_3(%arg0: i32) -> (i32, i32, i32) {
    %c0_i32 = arith.constant 0 : i32
    %c0_i32_0 = arith.constant 0 : i32
    %c0_i32_1 = arith.constant 0 : i32
    return %arg0, %c0_i32, %c0_i32_0 : i32, i32, i32
  }
  func.func @transform_4(%arg0: i32) -> (i32, i32, i32) {
    %c0_i32 = arith.constant 0 : i32
    %c0_i32_0 = arith.constant 0 : i32
    %c0_i32_1 = arith.constant 0 : i32
    return %arg0, %c0_i32, %c0_i32_0 : i32, i32, i32
  }
  func.func @transform_5(%arg0: i32) -> (i32, i32) {
    %c0_i32 = arith.constant 0 : i32
    %c0_i32_0 = arith.constant 0 : i32
    return %arg0, %c0_i32 : i32, i32
  }
  func.func @transform_6(%arg0: i32) -> (i32, i32) {
    %c0_i32 = arith.constant 0 : i32
    %c0_i32_0 = arith.constant 0 : i32
    return %arg0, %c0_i32 : i32, i32
  }
}

</mosaic_0001>

<bundles_post_ra>
// kernel: tpu_custom_call.1
= control target key start
LH: loop header
LB: loop body
LE: loop exit
PB: predicated region body
PF: predicated region fallthrough
CT: control target
= control target key end

     0   :  { %11 = vsyncpa [#allocation3], 0  ;;  %s1614_s0 = inlined_call_operand.vmem [shape: f32[16,32], index: 0, kind: input, shape index: {}]   ;;  %s1615_s1 = inlined_call_operand.hbm [shape: f32[32,32], index: 1, kind: input, shape index: {}]   ;;  %s1616_s2 = inlined_call_operand.vmem [shape: f32[1,32], index: 2, kind: input, shape index: {}]   ;;  %s1617_s3 = inlined_call_operand.hbm [shape: f32[16,8,32], index: 3, kind: input, shape index: {}]   ;;  %s1618_s4 = inlined_call_operand.hbm [shape: f32[16,8,32], index: 4, kind: input, shape index: {}]   ;;  %s1619_s5 = inlined_call_operand.vmem [shape: f32[16,8], index: 5, kind: input, shape index: {}]   ;;  %s1620_s6 = inlined_call_operand.hbm [shape: f32[16,32], index: 6, kind: output, shape index: {}]  }
   0x1   :  { %12 = vsyncpa [#allocation6], 0 }
   0x2   :  { %13 = vsyncpa [#allocation4], 0  ;;  %s35_s23 = sshll.u32 %s1617_s3, 4  ;;  %s1235_s24 = smov [#allocation5]   ;;  %s36_s23 = int_to_ptr.hbm [resolvable:$true] %s35_s23 }
   0x3   :  { %s37_s25 = sshll.u32 %s1235_s24, 4  ;;  %s20_s28 = sshll.u32 %s1615_s1, 4  ;;  %s38_s25 = int_to_ptr.vmem [resolvable:$true] %s37_s25  ;;  %s21_s28 = int_to_ptr.hbm [resolvable:$true] %s20_s28 }
   0x4   :  { %s1236_s29 = smov 128   ;;  %s1237_s30 = smov 8  }
   0x5   :  { %43 = dma.hbm_to_vmem [thread:$0]  %s36_s23, 2048, %s38_s25, [#allocation6], %s1236_s29, %s1236_s29, %s1237_s30  }
   0x6   :  { %s1238_s7 = smov [#allocation2]   ;;  %s48_s3 = sshll.u32 %s1618_s4, 4  ;;  %s49_s3 = int_to_ptr.hbm [resolvable:$true] %s48_s3 }
   0x7   :  { %s22_s8 = sshll.u32 %s1238_s7, 4  ;;  %s1239_s1 = smov [#allocation7]   ;;  %s23_s8 = int_to_ptr.vmem [resolvable:$true] %s22_s8 }
   0x8   :  { %28 = dma.hbm_to_vmem [thread:$0]  %s21_s28, 512, %s23_s8, [#allocation3], %s1236_s29, %s1236_s29, %s1237_s30  }
   0x9   :  { %s50_s11 = sshll.u32 %s1239_s1, 4  ;;  %s51_s11 = int_to_ptr.vmem [resolvable:$true] %s50_s11 }
   0xa   :  { %56 = dma.hbm_to_vmem [thread:$0]  %s49_s3, 2048, %s51_s11, [#allocation6], %s1236_s29, %s1236_s29, %s1237_s30  }
   0xb   :  { %1229 = dma.done.wait [#allocation3], 512  }
   0xc   :  { %1230 = vsyncadd [#allocation3], 4294966784 }
   0xd   :  { %1231 = dma.done.wait [#allocation6], 4096  }
   0xe   :  { %1232 = vsyncadd [#allocation6], 4294963200  ;;  %v276_v0 = vlaneseq  ;;  %v76_v2 = vld [vmem:[#allocation2 + $0x18] sm:$0xff]  ;;  %v75_v3 = vld [vmem:[#allocation2 + $0x10] sm:$0xff]  ;;  %vm77_vm0 = vcmask 261120   ;;  %vm501_vm1 = vcmask 1041409  }
   0xf   :  { %96 = vmatpush.msra.mxu0 %v76_v2  ;;  %1047 = vmatpush.msra.mxu1 %v76_v2  ;;  %v74_v4 = vld [vmem:[#allocation2 + $0x8] sm:$0xff]  ;;  %v271_v5 = vld [vmem:[%s1619_s5] sm:$0xff]  ;;  %v125_v34 = vld [vmem:[#allocation5 + $0x10] sm:$0xff]  ;;  %vm503_vm2 = vcmask 1042434   ;;  %vm505_vm3 = vcmask 1043459   ;;  %vm507_vm4 = vcmask 1044484  }
  0x10   :  { %v277_v1 = vshrl.u32 %v276_v0, 7  ;;  %v282_v6 = vperm.slane %v271_v5, 1  ;;  %v275_v7 = vperm.slane %v271_v5, 0  ;;  %v73_v8 = vld [vmem:[#allocation2] sm:$0xff]  ;;  %v72_v10 = vld [vmem:[%s1614_s0 + $0x8] sm:$0xff]  ;;  %v289_v11 = vperm.slane %v271_v5, 2 }
  0x11   :  { %97 = vmatpush.msra.mxu0 %v75_v3  ;;  %1048 = vmatpush.msra.mxu1 %v75_v3  ;;  %v71_v9 = vld [vmem:[%s1614_s0] sm:$0xff]  ;;  %v296_v12 = vperm.slane %v271_v5, 3  ;;  %v303_v13 = vperm.slane %v271_v5, 4  ;;  %v272_v14 = vld [vmem:[%s1619_s5 + $0x8] sm:$0xff]  ;;  %v310_v16 = vperm.slane %v271_v5, 5  ;;  %v317_v17 = vperm.slane %v271_v5, 6 }
  0x12   :  { %1059 = vset.pattern.permute.xlu2 %v277_v1  ;;  %1058 = vset.pattern.permute.xlu1 %v277_v1  ;;  %v338_v15 = vperm.slane %v272_v14, 1  ;;  %v359_v18 = vperm.slane %v272_v14, 4  ;;  %v324_v19 = vperm.slane %v271_v5, 7  ;;  %v331_v20 = vperm.slane %v272_v14, 0  ;;  %v131_v28 = vld [vmem:[#allocation5 + $0x40] sm:$0xff]  ;;  %v124_v42 = vld [vmem:[#allocation5 + $0x8] sm:$0xff] }
  0x13   :  { %1060 = vset.pattern.permute.xlu0 %v277_v1  ;;  %98 = vmatpush.msra.mxu0 %v74_v4  ;;  %v380_v21 = vperm.slane %v272_v14, 7  ;;  %v345_v22 = vperm.slane %v272_v14, 2  ;;  %v352_v23 = vperm.slane %v272_v14, 3  ;;  %v366_v24 = vperm.slane %v272_v14, 5  ;;  %v123_v29 = vld [vmem:[#allocation5] sm:$0xff]  ;;  %v126_v44 = vld [vmem:[#allocation5 + $0x18] sm:$0xff] }
  0x14   :  { %1049 = vmatpush.msra.mxu1 %v74_v4  ;;  %v373_v25 = vperm.slane %v272_v14, 6  ;;  %v127_v35 = vld [vmem:[#allocation5 + $0x20] sm:$0xff]  ;;  %v128_v55 = vld [vmem:[#allocation5 + $0x28] sm:$0xff]  ;;  %v129_v58 = vld [vmem:[#allocation5 + $0x30] sm:$0xff]  ;;  %vm509_vm5 = vcmask 1045509   ;;  %vm511_vm6 = vcmask 1046534  }
  0x15   :  { %99 = vmatpush.msra.mxu0 %v73_v8  ;;  %v1316_v53 = vld [vmem:[%s1616_s2] ss:$0 sm:$0xff]  ;;  %v130_v62 = vld [vmem:[#allocation5 + $0x38] sm:$0xff]  ;;  %vm513_vm7 = vcmask 1047559   ;;  %vm524_vm8 = vcmask 64512   ;;  %s1241_s2 = smov [#allocation8]  }
  0x16   :  { %1050 = vmatpush.msra.mxu1 %v73_v8  ;;  %1045 = vmatmul.msk.f32.vlgmr.msra.gmra.mxu0 %vm77_vm0, %v71_v9  ;;  %s1029_s19 = sshll.u32 %s1241_s2, 4  ;;  %s1031_s22 = sshll.u32 %s1620_s6, 4  ;;  %s1030_s19 = int_to_ptr.vmem [resolvable:$true] %s1029_s19  ;;  %s1032_s22 = int_to_ptr.hbm [resolvable:$true] %s1031_s22 }
  0x17   :  { %1046 = vmatmul.msk.f32.vlgmr.msra.gmra.mxu1 %vm77_vm0, %v72_v10 }
  0x1a   :  { %287 = vperm.xlu2 %1059, %v282_v6   ;;  %280 = vperm.xlu1 %1058, %v275_v7  }
  0x1b   :  { %294 = vperm.xlu0 %1060, %v289_v11  }
  0x22   :  { %301 = vperm.xlu2 %1059, %v296_v12   ;;  %308 = vperm.xlu1 %1058, %v303_v13  }
  0x23   :  { %343 = vperm.xlu0 %1060, %v338_v15  }
  0x2a   :  { %315 = vperm.xlu2 %1059, %v310_v16   ;;  %322 = vperm.xlu1 %1058, %v317_v17   ;;  %v134_v17 = vld [vmem:[#allocation5 + $0x58] sm:$0xff] }
  0x2b   :  { %364 = vperm.xlu0 %1060, %v359_v18  }
  0x32   :  { %329 = vperm.xlu2 %1059, %v324_v19   ;;  %336 = vperm.xlu1 %1058, %v331_v20   ;;  %v132_v20 = vld [vmem:[#allocation5 + $0x48] sm:$0xff] }
  0x33   :  { %385 = vperm.xlu0 %1060, %v380_v21  }
  0x3a   :  { %350 = vperm.xlu2 %1059, %v345_v22   ;;  %357 = vperm.xlu1 %1058, %v352_v23   ;;  %v133_v23 = vld [vmem:[#allocation5 + $0x50] sm:$0xff] }
  0x42   :  { %371 = vperm.xlu2 %1059, %v366_v24   ;;  %378 = vperm.xlu1 %1058, %v373_v25  }
  0x93   :  { %v101_v26 = vpop.f32.mrf.mxu0 }
  0x94   :  { %v1310_v27 = vpop.f32.mrf.mxu1  ;;  %v139_v31 = vperm.slane %v101_v26, 0  ;;  %v110_v32 = vrot.slane %v101_v26, 2  ;;  %v112_v33 = vrot.slane %v101_v26, 4  ;;  %v109_v36 = vrot.slane %v101_v26, 1 }
  0x95   :  { %v147_v30 = vperm.slane %v1310_v27, 0  ;;  %v111_v37 = vrot.slane %v101_v26, 3  ;;  %v113_v48 = vrot.slane %v101_v26, 5  ;;  %v114_v50 = vrot.slane %v101_v26, 6 }
  0x96   :  { %v171_v39 = vadd.f32 %v139_v31, %v123_v29  ;;  %v141_v40 = vperm.slane %v110_v32, 0  ;;  %v143_v41 = vperm.slane %v112_v33, 0  ;;  %v140_v43 = vperm.slane %v109_v36, 0 }
  0x97   :  { %v179_v38 = vadd.f32 %v147_v30, %v131_v28  ;;  %v142_v45 = vperm.slane %v111_v37, 0  ;;  %v115_v52 = vrot.slane %v101_v26, 7  ;;  %v144_v54 = vperm.slane %v113_v48, 0 }
  0x98   :  { %v173_v46 = vadd.f32 %v141_v40, %v125_v34  ;;  %v175_v47 = vadd.f32 %v143_v41, %v127_v35  ;;  %v172_v49 = vadd.f32 %v140_v43, %v124_v42  ;;  %v145_v56 = vperm.slane %v114_v50, 0  ;;  %v135_v42 = vld [vmem:[#allocation5 + $0x60] sm:$0xff] }
  0x99   :  { %1065 = vtanh.f32 %v179_v38  ;;  %v174_v51 = vadd.f32 %v142_v45, %v126_v44  ;;  %v146_v59 = vperm.slane %v115_v52, 0  ;;  %v176_v2 = vadd.f32 %v144_v54, %v128_v55  ;;  %v136_v45 = vld [vmem:[#allocation5 + $0x68] sm:$0xff] }
  0x9a   :  { %1067 = vtanh.f32 %v171_v39  ;;  %v118_v3 = vrot.slane %v1310_v27, 3  ;;  %v177_v6 = vadd.f32 %v145_v56, %v129_v58  ;;  %v116_v7 = vrot.slane %v1310_v27, 1  ;;  %v137_v39 = vld [vmem:[#allocation5 + $0x70] sm:$0xff] }
  0x9b   :  { %1069 = vtanh.f32 %v173_v46  ;;  %v178_v10 = vadd.f32 %v146_v59, %v130_v62  ;;  %v117_v11 = vrot.slane %v1310_v27, 2  ;;  %v121_v25 = vrot.slane %v1310_v27, 6 }
  0x9c   :  { %1071 = vtanh.f32 %v175_v47  ;;  %v150_v15 = vperm.slane %v118_v3, 0  ;;  %v148_v18 = vperm.slane %v116_v7, 0  ;;  %v119_v29 = vrot.slane %v1310_v27, 4 }
  0x9d   :  { %1073 = vtanh.f32 %v172_v49  ;;  %v149_v21 = vperm.slane %v117_v11, 0  ;;  %v120_v33 = vrot.slane %v1310_v27, 5  ;;  %v153_v37 = vperm.slane %v121_v25, 0 }
  0x9e   :  { %1075 = vtanh.f32 %v174_v51  ;;  %v182_v24 = vadd.f32 %v150_v15, %v134_v17  ;;  %v180_v28 = vadd.f32 %v148_v18, %v132_v20  ;;  %v151_v40 = vperm.slane %v119_v29, 0  ;;  %v281_v15 = vpop.permute.xlu1 %280 }
  0x9f   :  { %v1066_v57 = vpop.eup %1065  ;;  %1077 = vtanh.f32 %v176_v2  ;;  %v181_v32 = vadd.f32 %v149_v21, %v133_v23  ;;  %v152_v43 = vperm.slane %v120_v33, 0  ;;  %v185_v46 = vadd.f32 %v153_v37, %v137_v39 }
  0xa0   :  { %v1068_v60 = vpop.eup %1067  ;;  %v215_v61 = vmul.f32 %v1066_v57, %v1316_v53  ;;  %1079 = vtanh.f32 %v177_v6  ;;  %v183_v48 = vadd.f32 %v151_v40, %v135_v42  ;;  %v122_v49 = vrot.slane %v1310_v27, 7  ;;  %v138_v27 = vld [vmem:[#allocation5 + $0x78] sm:$0xff] }
  0xa1   :  { %v1070_v63 = vpop.eup %1069  ;;  %v207_v1 = vmul.f32 %v1068_v60, %v1316_v53  ;;  %1081 = vtanh.f32 %v178_v10  ;;  %v184_v52 = vadd.f32 %v152_v43, %v136_v45  ;;  %v1240_v21 = vmov 0  }
  0xa2   :  { %v247_v4 = vsel %vm77_vm0, %v215_v61, 0.0  ;;  %v209_v5 = vmul.f32 %v1070_v63, %v1316_v53  ;;  %v1072_v8 = vpop.eup %1071  ;;  %1083 = vtanh.f32 %v182_v24  ;;  %v154_v58 = vperm.slane %v122_v49, 0  ;;  %1061 = vset.pattern.permute.xlu2 %v1240_v21  ;;  %1063 = vset.pattern.permute.xlu0 %v1240_v21 }
  0xa3   :  { %248 = vadd.xlane.f32.xlu2 %v247_v4  ;;  %v223_v9 = vsel %vm77_vm0, %v207_v1, 0.0  ;;  %v1074_v12 = vpop.eup %1073  ;;  %v211_v16 = vmul.f32 %v1072_v8, %v1316_v53  ;;  %1085 = vtanh.f32 %v180_v28  ;;  %1062 = vset.pattern.permute.xlu1 %v1240_v21 }
  0xa4   :  { %224 = vadd.xlane.f32.xlu0 %v223_v9  ;;  %v229_v13 = vsel %vm77_vm0, %v209_v5, 0.0  ;;  %v1076_v14 = vpop.eup %1075  ;;  %v208_v19 = vmul.f32 %v1074_v12, %v1316_v53  ;;  %1087 = vtanh.f32 %v181_v32  ;;  %v186_v62 = vadd.f32 %v154_v58, %v138_v27 }
  0xa5   :  { %230 = vadd.xlane.f32.xlu1 %v229_v13  ;;  %v210_v22 = vmul.f32 %v1076_v14, %v1316_v53  ;;  %v235_v26 = vsel %vm77_vm0, %v211_v16, 0.0  ;;  %v1078_v30 = vpop.eup %1077  ;;  %1089 = vtanh.f32 %v185_v46  ;;  %v288_v14 = vpop.permute.xlu2 %287 }
  0xa6   :  { %v226_v31 = vsel %vm77_vm0, %v208_v19, 0.0  ;;  %v1080_v34 = vpop.eup %1079  ;;  %v212_v38 = vmul.f32 %v1078_v30, %v1316_v53  ;;  %1091 = vtanh.f32 %v183_v48  ;;  %v309_v17 = vpop.permute.xlu1 %308 }
  0xa7   :  { %v232_v35 = vsel %vm77_vm0, %v210_v22, 0.0  ;;  %v1082_v36 = vpop.eup %1081  ;;  %v213_v41 = vmul.f32 %v1080_v34, %v1316_v53  ;;  %1093 = vtanh.f32 %v184_v52  ;;  %v295_v19 = vpop.permute.xlu0 %294 }
  0xa8   :  { %v214_v44 = vmul.f32 %v1082_v36, %v1316_v53  ;;  %v238_v47 = vsel %vm77_vm0, %v212_v38, 0.0  ;;  %v1084_v50 = vpop.eup %1083  ;;  %1095 = vtanh.f32 %v186_v62 }
  0xa9   :  { %v241_v51 = vsel %vm77_vm0, %v213_v41, 0.0  ;;  %v1086_v54 = vpop.eup %1085  ;;  %v218_v57 = vmul.f32 %v1084_v50, %v1316_v53 }
  0xaa   :  { %v244_v55 = vsel %vm77_vm0, %v214_v44, 0.0  ;;  %v1088_v56 = vpop.eup %1087  ;;  %v216_v59 = vmul.f32 %v1086_v54, %v1316_v53 }
  0xab   :  { %236 = vadd.xlane.f32.xlu2 %v235_v26  ;;  %v217_v60 = vmul.f32 %v1088_v56, %v1316_v53  ;;  %v256_v61 = vsel %vm77_vm0, %v218_v57, 0.0  ;;  %v1090_v63 = vpop.eup %1089 }
  0xac   :  { %227 = vadd.xlane.f32.xlu0 %v226_v31  ;;  %v250_v1 = vsel %vm77_vm0, %v216_v59, 0.0  ;;  %v1092_v2 = vpop.eup %1091  ;;  %v221_v5 = vmul.f32 %v1090_v63, %v1316_v53 }
  0xad   :  { %233 = vadd.xlane.f32.xlu1 %v232_v35  ;;  %v253_v3 = vsel %vm77_vm0, %v217_v60, 0.0  ;;  %v1094_v4 = vpop.eup %1093  ;;  %v219_v6 = vmul.f32 %v1092_v2, %v1316_v53  ;;  %v302_v16 = vpop.permute.xlu2 %301 }
  0xae   :  { %v220_v7 = vmul.f32 %v1094_v4, %v1316_v53  ;;  %v265_v8 = vsel %vm77_vm0, %v221_v5, 0.0  ;;  %v1096_v10 = vpop.eup %1095  ;;  %v323_v20 = vpop.permute.xlu1 %322 }
  0xaf   :  { %v259_v9 = vsel %vm77_vm0, %v219_v6, 0.0  ;;  %v222_v12 = vmul.f32 %v1096_v10, %v1316_v53  ;;  %v344_v23 = vpop.permute.xlu0 %343 }
  0xb0   :  { %v262_v11 = vsel %vm77_vm0, %v220_v7, 0.0 }
  0xb1   :  { %v268_v13 = vsel %vm77_vm0, %v222_v12, 0.0 }
  0xb3   :  { %239 = vadd.xlane.f32.xlu2 %v238_v47 }
  0xb4   :  { %242 = vadd.xlane.f32.xlu0 %v241_v51 }
  0xb5   :  { %245 = vadd.xlane.f32.xlu1 %v244_v55  ;;  %v316_v18 = vpop.permute.xlu2 %315 }
  0xb6   :  { %v337_v24 = vpop.permute.xlu1 %336 }
  0xb7   :  { %v365_v26 = vpop.permute.xlu0 %364 }
  0xbb   :  { %257 = vadd.xlane.f32.xlu2 %v256_v61 }
  0xbc   :  { %251 = vadd.xlane.f32.xlu0 %v250_v1 }
  0xbd   :  { %254 = vadd.xlane.f32.xlu1 %v253_v3  ;;  %v330_v22 = vpop.permute.xlu2 %329  ;;  %v1406_v3 = vand.u32 127, %v276_v0 }
  0xbe   :  { %v358_v53 = vpop.permute.xlu1 %357 }
  0xbf   :  { %v386_v29 = vpop.permute.xlu0 %385 }
  0xc3   :  { %266 = vadd.xlane.f32.xlu2 %v265_v8 }
  0xc4   :  { %260 = vadd.xlane.f32.xlu0 %v259_v9 }
  0xc5   :  { %263 = vadd.xlane.f32.xlu1 %v262_v11  ;;  %v351_v25 = vpop.permute.xlu2 %350 }
  0xc6   :  { %v379_v30 = vpop.permute.xlu1 %378 }
  0xcc   :  { %269 = vadd.xlane.f32.xlu0 %v268_v13 }
  0xcd   :  { %v372_v28 = vpop.permute.xlu2 %371 }
 0x116   :  { %v249_v31 = vpop.xlane.xlu2 %248 }
 0x117   :  { %v225_v32 = vpop.xlane.xlu0 %224  ;;  %v1363_v38 = vadd.f32 %v337_v24, %v249_v31 }
 0x118   :  { %v1357_v33 = vadd.f32 %v281_v15, %v225_v32  ;;  %v231_v34 = vpop.xlane.xlu1 %230 }
 0x119   :  { %v1359_v35 = vadd.f32 %v295_v19, %v231_v34 }
 0x11a   :  { %436 = vperm.xlu2 %1061, %v1357_v33  }
 0x11b   :  { %442 = vperm.xlu0 %1063, %v1359_v35  }
 0x11e   :  { %v237_v36 = vpop.xlane.xlu2 %236 }
 0x11f   :  { %v228_v37 = vpop.xlane.xlu0 %227  ;;  %v1369_v42 = vadd.f32 %v309_v17, %v237_v36 }
 0x120   :  { %v1365_v39 = vadd.f32 %v288_v14, %v228_v37  ;;  %v234_v40 = vpop.xlane.xlu1 %233 }
 0x121   :  { %v1371_v43 = vadd.f32 %v302_v16, %v234_v40 }
 0x122   :  { %460 = vperm.xlu2 %1061, %v1363_v38   ;;  %439 = vperm.xlu1 %1062, %v1365_v39  }
 0x126   :  { %v240_v45 = vpop.xlane.xlu2 %239 }
 0x127   :  { %v243_v41 = vpop.xlane.xlu0 %242  ;;  %v1378_v47 = vadd.f32 %v316_v18, %v240_v45 }
 0x128   :  { %v246_v44 = vpop.xlane.xlu1 %245  ;;  %v1380_v48 = vadd.f32 %v323_v20, %v243_v41 }
 0x129   :  { %v1373_v46 = vadd.f32 %v330_v22, %v246_v44 }
 0x12a   :  { %445 = vperm.xlu2 %1061, %v1371_v43   ;;  %448 = vperm.xlu1 %1062, %v1369_v42  }
 0x12b   :  { %457 = vperm.xlu0 %1063, %v1373_v46  }
 0x12e   :  { %v258_v52 = vpop.xlane.xlu2 %257 }
 0x12f   :  { %v252_v50 = vpop.xlane.xlu0 %251  ;;  %v1387_v54 = vadd.f32 %v358_v53, %v258_v52 }
 0x130   :  { %v255_v49 = vpop.xlane.xlu1 %254  ;;  %v1389_v55 = vadd.f32 %v344_v23, %v252_v50 }
 0x131   :  { %v1382_v51 = vadd.f32 %v351_v25, %v255_v49 }
 0x132   :  { %451 = vperm.xlu2 %1061, %v1378_v47   ;;  %454 = vperm.xlu1 %1062, %v1380_v48  }
 0x133   :  { %466 = vperm.xlu0 %1063, %v1382_v51  }
 0x136   :  { %v267_v59 = vpop.xlane.xlu2 %266 }
 0x137   :  { %v261_v58 = vpop.xlane.xlu0 %260  ;;  %v1396_v27 = vadd.f32 %v379_v30, %v267_v59 }
 0x138   :  { %v264_v56 = vpop.xlane.xlu1 %263  ;;  %v1398_v60 = vadd.f32 %v365_v26, %v261_v58 }
 0x139   :  { %v1391_v57 = vadd.f32 %v372_v28, %v264_v56 }
 0x13a   :  { %469 = vperm.xlu2 %1061, %v1387_v54   ;;  %463 = vperm.xlu1 %1062, %v1389_v55  }
 0x13b   :  { %475 = vperm.xlu0 %1063, %v1391_v57  }
 0x13f   :  { %v270_v61 = vpop.xlane.xlu0 %269 }
 0x140   :  { %v1402_v62 = vadd.f32 %v386_v29, %v270_v61 }
 0x142   :  { %478 = vperm.xlu2 %1061, %v1396_v27   ;;  %472 = vperm.xlu1 %1062, %v1398_v60  }
 0x14a   :  { %481 = vperm.xlu1 %1062, %v1402_v62  }
 0x174   :  { %v437_v63 = vpop.permute.xlu2 %436 }
 0x175   :  { %v485_v6 = vperm.slane %v437_v63, %v1406_v3 }
 0x17c   :  { %v461_v1 = vpop.permute.xlu2 %460 }
 0x17d   :  { %v493_v28 = vperm.slane %v461_v1, %v1406_v3 }
 0x184   :  { %v446_v4 = vpop.permute.xlu2 %445 }
 0x185   :  { %v488_v0 = vperm.slane %v446_v4, %v1406_v3 }
 0x18c   :  { %v452_v13 = vpop.permute.xlu2 %451 }
 0x18d   :  { %v443_v7 = vpop.permute.xlu0 %442  ;;  %v490_v17 = vperm.slane %v452_v13, %v1406_v3 }
 0x18e   :  { %v487_v10 = vperm.slane %v443_v7, %v1406_v3 }
 0x194   :  { %v440_v2 = vpop.permute.xlu1 %439  ;;  %v470_v29 = vpop.permute.xlu2 %469 }
 0x195   :  { %v486_v5 = vperm.slane %v440_v2, %v1406_v3  ;;  %v496_v36 = vperm.slane %v470_v29, %v1406_v3 }
 0x197   :  { %v502_v8 = vsel %vm501_vm1, %v486_v5, %v485_v6 }
 0x198   :  { %v504_v11 = vsel %vm503_vm2, %v487_v10, %v502_v8 }
 0x199   :  { %v506_v14 = vsel %vm505_vm3, %v488_v0, %v504_v11 }
 0x19c   :  { %v449_v9 = vpop.permute.xlu1 %448  ;;  %v479_v45 = vpop.permute.xlu2 %478 }
 0x19d   :  { %v489_v12 = vperm.slane %v449_v9, %v1406_v3  ;;  %v458_v15 = vpop.permute.xlu0 %457  ;;  %v499_v52 = vperm.slane %v479_v45, %v1406_v3 }
 0x19e   :  { %v492_v20 = vperm.slane %v458_v15, %v1406_v3 }
 0x19f   :  { %v508_v16 = vsel %vm507_vm4, %v489_v12, %v506_v14 }
 0x1a0   :  { %v510_v21 = vsel %vm509_vm5, %v490_v17, %v508_v16 }
 0x1a4   :  { %v455_v18 = vpop.permute.xlu1 %454 }
 0x1a5   :  { %v491_v19 = vperm.slane %v455_v18, %v1406_v3  ;;  %v467_v25 = vpop.permute.xlu0 %466 }
 0x1a6   :  { %v495_v31 = vperm.slane %v467_v25, %v1406_v3 }
 0x1a7   :  { %v512_v22 = vsel %vm511_vm6, %v491_v19, %v510_v21 }
 0x1a8   :  { %v514_v23 = vsel %vm513_vm7, %v492_v20, %v512_v22 }
 0x1a9   :  { %v525_v24 = vsel %vm524_vm8, %v514_v23, -inf }
 0x1aa   :  { %526 = vmax.xlane.f32.xlu0 %v525_v24 }
 0x1ac   :  { %v464_v26 = vpop.permute.xlu1 %463 }
 0x1ad   :  { %v494_v53 = vperm.slane %v464_v26, %v1406_v3  ;;  %v476_v40 = vpop.permute.xlu0 %475 }
 0x1ae   :  { %v498_v49 = vperm.slane %v476_v40, %v1406_v3 }
 0x1af   :  { %v515_v30 = vsel %vm501_vm1, %v494_v53, %v493_v28 }
 0x1b0   :  { %v516_v32 = vsel %vm503_vm2, %v495_v31, %v515_v30 }
 0x1b1   :  { %v517_v41 = vsel %vm505_vm3, %v496_v36, %v516_v32 }
 0x1b4   :  { %v473_v34 = vpop.permute.xlu1 %472 }
 0x1b5   :  { %v497_v37 = vperm.slane %v473_v34, %v1406_v3 }
 0x1b7   :  { %v518_v44 = vsel %vm507_vm4, %v497_v37, %v517_v41 }
 0x1b8   :  { %v519_v50 = vsel %vm509_vm5, %v498_v49, %v518_v44 }
 0x1b9   :  { %v520_v59 = vsel %vm511_vm6, %v499_v52, %v519_v50 }
 0x1bc   :  { %v482_v56 = vpop.permute.xlu1 %481 }
 0x1bd   :  { %v500_v58 = vperm.slane %v482_v56, %v1406_v3 }
 0x1bf   :  { %v521_v61 = vsel %vm513_vm7, %v500_v58, %v520_v59 }
 0x1c0   :  { %v528_v63 = vsel %vm524_vm8, %v521_v61, -inf }
 0x1c1   :  { %529 = vmax.xlane.f32.xlu2 %v528_v63 }
 0x21d   :  { %v1440_v1 = vpop.xlane.xlu0 %526 }
 0x21e   :  { %v540_v2 = vperm.slane %v1440_v1, 7  ;;  %v539_v4 = vperm.slane %v1440_v1, 6  ;;  %v533_v5 = vperm.slane %v1440_v1, 0  ;;  %v534_v9 = vperm.slane %v1440_v1, 1 }
 0x21f   :  { %v535_v15 = vperm.slane %v1440_v1, 2  ;;  %v537_v28 = vperm.slane %v1440_v1, 4 }
 0x220   :  { %v572_v6 = vsub.f32 %v1373_v46, %v540_v2  ;;  %v571_v7 = vsub.f32 %v1380_v48, %v539_v4  ;;  %v565_v8 = vsub.f32 %v1357_v33, %v533_v5  ;;  %v566_v0 = vsub.f32 %v1365_v39, %v534_v9 }
 0x221   :  { %v567_v48 = vsub.f32 %v1359_v35, %v535_v15  ;;  %v536_v39 = vperm.slane %v1440_v1, 3 }
 0x222   :  { %v595_v10 = vmul.f32 1.442695, %v572_v6  ;;  %v593_v11 = vmul.f32 1.442695, %v571_v7  ;;  %v581_v12 = vmul.f32 1.442695, %v565_v8 }
 0x223   :  { %v583_v14 = vmul.f32 1.442695, %v566_v0  ;;  %v585_v16 = vmul.f32 1.442695, %v567_v48  ;;  %v568_v21 = vsub.f32 %v1371_v43, %v536_v39 }
 0x224   :  { %1097 = vpow2.f32 %v595_v10 }
 0x225   :  { %1099 = vpow2.f32 %v593_v11  ;;  %v587_v53 = vmul.f32 1.442695, %v568_v21 }
 0x226   :  { %1101 = vpow2.f32 %v581_v12 }
 0x227   :  { %1103 = vpow2.f32 %v583_v14 }
 0x228   :  { %1105 = vpow2.f32 %v585_v16 }
 0x22a   :  { %v1450_v13 = vpop.eup %1097 }
 0x22b   :  { %v1453_v46 = vpop.eup %1099  ;;  %651 = vperm.xlu0 %1063, %v1450_v13  }
 0x22c   :  { %v1456_v33 = vpop.eup %1101  ;;  %648 = vperm.xlu2 %1061, %v1453_v46  }
 0x22d   :  { %630 = vperm.xlu1 %1062, %v1456_v33   ;;  %v1462_v17 = vpop.eup %1103 }
 0x22e   :  { %v1476_v30 = vpop.eup %1105 }
 0x234   :  { %v1464_v18 = vpop.xlane.xlu2 %529 }
 0x235   :  { %633 = vperm.xlu1 %1062, %v1462_v17   ;;  %v543_v19 = vperm.slane %v1464_v18, 2  ;;  %v545_v20 = vperm.slane %v1464_v18, 4  ;;  %v546_v23 = vperm.slane %v1464_v18, 5  ;;  %v548_v24 = vperm.slane %v1464_v18, 7 }
 0x236   :  { %v541_v44 = vperm.slane %v1464_v18, 0  ;;  %v544_v59 = vperm.slane %v1464_v18, 3 }
 0x237   :  { %v575_v22 = vsub.f32 %v1382_v51, %v543_v19  ;;  %v577_v35 = vsub.f32 %v1398_v60, %v545_v20  ;;  %v578_v29 = vsub.f32 %v1391_v57, %v546_v23  ;;  %v580_v43 = vsub.f32 %v1402_v62, %v548_v24 }
 0x238   :  { %v569_v51 = vsub.f32 %v1369_v42, %v537_v28  ;;  %v538_v57 = vperm.slane %v1440_v1, 5  ;;  %v573_v49 = vsub.f32 %v1363_v38, %v541_v44  ;;  %v576_v38 = vsub.f32 %v1387_v54, %v544_v59 }
 0x239   :  { %v601_v25 = vmul.f32 1.442695, %v575_v22  ;;  %v605_v26 = vmul.f32 1.442695, %v577_v35  ;;  %v607_v60 = vmul.f32 1.442695, %v578_v29 }
 0x23a   :  { %v611_v31 = vmul.f32 1.442695, %v580_v43  ;;  %v589_v36 = vmul.f32 1.442695, %v569_v51  ;;  %v570_v42 = vsub.f32 %v1378_v47, %v538_v57  ;;  %v597_v50 = vmul.f32 1.442695, %v573_v49 }
 0x23b   :  { %1107 = vpow2.f32 %v601_v25  ;;  %v542_v47 = vperm.slane %v1464_v18, 1  ;;  %v603_v63 = vmul.f32 1.442695, %v576_v38  ;;  %v547_v1 = vperm.slane %v1464_v18, 6 }
 0x23c   :  { %1109 = vpow2.f32 %v605_v26  ;;  %v591_v41 = vmul.f32 1.442695, %v570_v42 }
 0x23d   :  { %636 = vperm.xlu1 %1062, %v1476_v30   ;;  %1111 = vpow2.f32 %v587_v53  ;;  %v574_v56 = vsub.f32 %v1389_v55, %v542_v47  ;;  %v579_v55 = vsub.f32 %v1396_v27, %v547_v1 }
 0x23e   :  { %1113 = vpow2.f32 %v607_v60 }
 0x23f   :  { %1115 = vpow2.f32 %v611_v31  ;;  %v599_v58 = vmul.f32 1.442695, %v574_v56  ;;  %v609_v4 = vmul.f32 1.442695, %v579_v55 }
 0x240   :  { %1117 = vpow2.f32 %v589_v36 }
 0x241   :  { %v1481_v32 = vpop.eup %1107  ;;  %1119 = vpow2.f32 %v591_v41 }
 0x242   :  { %v1483_v34 = vpop.eup %1109  ;;  %660 = vperm.xlu0 %1063, %v1481_v32   ;;  %1121 = vpow2.f32 %v597_v50 }
 0x243   :  { %666 = vperm.xlu2 %1061, %v1483_v34   ;;  %v1488_v62 = vpop.eup %1111  ;;  %1123 = vpow2.f32 %v599_v58 }
 0x244   :  { %v1492_v37 = vpop.eup %1113  ;;  %1125 = vpow2.f32 %v603_v63 }
 0x245   :  { %639 = vperm.xlu1 %1062, %v1488_v62   ;;  %v1494_v40 = vpop.eup %1115  ;;  %1127 = vpow2.f32 %v609_v4 }
 0x246   :  { %v1499_v45 = vpop.eup %1117 }
 0x247   :  { %v1504_v52 = vpop.eup %1119 }
 0x248   :  { %v1509_v61 = vpop.eup %1121 }
 0x249   :  { %v1514_v2 = vpop.eup %1123 }
 0x24a   :  { %669 = vperm.xlu0 %1063, %v1492_v37   ;;  %v1518_v5 = vpop.eup %1125 }
 0x24b   :  { %675 = vperm.xlu2 %1061, %v1494_v40   ;;  %v1521_v6 = vpop.eup %1127 }
 0x24d   :  { %642 = vperm.xlu1 %1062, %v1499_v45  }
 0x255   :  { %645 = vperm.xlu1 %1062, %v1504_v52  }
 0x25d   :  { %654 = vperm.xlu1 %1062, %v1509_v61  }
 0x265   :  { %657 = vperm.xlu1 %1062, %v1514_v2  }
 0x26d   :  { %663 = vperm.xlu1 %1062, %v1518_v5  }
 0x275   :  { %672 = vperm.xlu1 %1062, %v1521_v6  }
 0x286   :  { %v649_v15 = vpop.permute.xlu2 %648 }
 0x287   :  { %v683_v21 = vperm.slane %v649_v15, %v1406_v3 }
 0x29d   :  { %v652_v16 = vpop.permute.xlu0 %651  ;;  %v667_v51 = vpop.permute.xlu2 %666 }
 0x29e   :  { %v684_v35 = vperm.slane %v652_v16, %v1406_v3  ;;  %v689_v49 = vperm.slane %v667_v51, %v1406_v3 }
 0x29f   :  { %v631_v54 = vpop.permute.xlu1 %630 }
 0x2a0   :  { %v677_v27 = vperm.slane %v631_v54, %v1406_v3 }
 0x2a5   :  { %v676_v47 = vpop.permute.xlu2 %675 }
 0x2a6   :  { %v692_v63 = vperm.slane %v676_v47, %v1406_v3  ;;  %v770_v47 = vld [vmem:[#allocation7 + $0x18] sm:$0xff] }
 0x2a7   :  { %v634_v7 = vpop.permute.xlu1 %633 }
 0x2a8   :  { %v678_v11 = vperm.slane %v634_v7, %v1406_v3 }
 0x2aa   :  { %v693_v48 = vsel %vm501_vm1, %v678_v11, %v677_v27 }
 0x2af   :  { %v637_v8 = vpop.permute.xlu1 %636 }
 0x2b0   :  { %v679_v12 = vperm.slane %v637_v8, %v1406_v3 }
 0x2b2   :  { %v694_v39 = vsel %vm503_vm2, %v679_v12, %v693_v48 }
 0x2b4   :  { %v661_v29 = vpop.permute.xlu0 %660 }
 0x2b5   :  { %v687_v57 = vperm.slane %v661_v29, %v1406_v3 }
 0x2b7   :  { %v640_v9 = vpop.permute.xlu1 %639 }
 0x2b8   :  { %v680_v0 = vperm.slane %v640_v9, %v1406_v3 }
 0x2ba   :  { %v695_v19 = vsel %vm505_vm3, %v680_v0, %v694_v39 }
 0x2bc   :  { %v670_v50 = vpop.permute.xlu0 %669 }
 0x2bd   :  { %v690_v58 = vperm.slane %v670_v50, %v1406_v3 }
 0x2bf   :  { %v643_v10 = vpop.permute.xlu1 %642 }
 0x2c0   :  { %v681_v14 = vperm.slane %v643_v10, %v1406_v3 }
 0x2c2   :  { %v696_v22 = vsel %vm507_vm4, %v681_v14, %v695_v19 }
 0x2c7   :  { %v646_v18 = vpop.permute.xlu1 %645 }
 0x2c8   :  { %v682_v20 = vperm.slane %v646_v18, %v1406_v3 }
 0x2ca   :  { %v697_v23 = vsel %vm509_vm5, %v682_v20, %v696_v22 }
 0x2cb   :  { %v698_v24 = vsel %vm511_vm6, %v683_v21, %v697_v23 }
 0x2cc   :  { %v699_v25 = vsel %vm513_vm7, %v684_v35, %v698_v24 }
 0x2cd   :  { %v709_v26 = vsel %vm524_vm8, %v699_v25, 0.0 }
 0x2ce   :  { %710 = vadd.xlane.f32.xlu0 %v709_v26 }
 0x2cf   :  { %v655_v53 = vpop.permute.xlu1 %654 }
 0x2d0   :  { %v685_v60 = vperm.slane %v655_v53, %v1406_v3 }
 0x2d7   :  { %v658_v28 = vpop.permute.xlu1 %657 }
 0x2d8   :  { %v686_v43 = vperm.slane %v658_v28, %v1406_v3 }
 0x2da   :  { %v700_v31 = vsel %vm501_vm1, %v686_v43, %v685_v60  ;;  %v768_v60 = vld [vmem:[#allocation7 + $0x8] sm:$0xff] }
 0x2db   :  { %v701_v41 = vsel %vm503_vm2, %v687_v57, %v700_v31  ;;  %v775_v57 = vld [vmem:[#allocation7 + $0x40] sm:$0xff] }
 0x2df   :  { %v664_v36 = vpop.permute.xlu1 %663 }
 0x2e0   :  { %v688_v42 = vperm.slane %v664_v36, %v1406_v3 }
 0x2e2   :  { %v702_v44 = vsel %vm505_vm3, %v688_v42, %v701_v41  ;;  %v769_v42 = vld [vmem:[#allocation7 + $0x10] sm:$0xff] }
 0x2e3   :  { %v703_v56 = vsel %vm507_vm4, %v689_v49, %v702_v44 }
 0x2e4   :  { %v704_v1 = vsel %vm509_vm5, %v690_v58, %v703_v56  ;;  %v777_v58 = vld [vmem:[#allocation7 + $0x50] sm:$0xff] }
 0x2e7   :  { %v673_v59 = vpop.permute.xlu1 %672 }
 0x2e8   :  { %v691_v38 = vperm.slane %v673_v59, %v1406_v3 }
 0x2ea   :  { %v705_v55 = vsel %vm511_vm6, %v691_v38, %v704_v1  ;;  %v771_v1 = vld [vmem:[#allocation7 + $0x20] sm:$0xff] }
 0x2eb   :  { %v706_v4 = vsel %vm513_vm7, %v692_v63, %v705_v55 }
 0x2ec   :  { %v712_v54 = vsel %vm524_vm8, %v706_v4, 0.0 }
 0x2ed   :  { %713 = vadd.xlane.f32.xlu1 %v712_v54  ;;  %v772_v54 = vld [vmem:[#allocation7 + $0x28] sm:$0xff] }
 0x341   :  { %v711_v7 = vpop.xlane.xlu0 %710 }
 0x342   :  { %1129 = vrcp.f32 %v711_v7 }
 0x348   :  { %v1130_v8 = vpop.eup %1129 }
 0x349   :  { %v724_v9 = vperm.slane %v1130_v8, 5  ;;  %v719_v10 = vperm.slane %v1130_v8, 0  ;;  %v720_v3 = vperm.slane %v1130_v8, 1  ;;  %v721_v0 = vperm.slane %v1130_v8, 2 }
 0x34a   :  { %v722_v15 = vperm.slane %v1130_v8, 3 }
 0x34b   :  { %v756_v11 = vmul.f32 %v1504_v52, %v724_v9  ;;  %v751_v12 = vmul.f32 %v1456_v33, %v719_v10  ;;  %v752_v27 = vmul.f32 %v1462_v17, %v720_v3  ;;  %v753_v14 = vmul.f32 %v1476_v30, %v721_v0 }
 0x34c   :  { %v754_v16 = vmul.f32 %v1488_v62, %v722_v15  ;;  %v723_v52 = vperm.slane %v1130_v8, 4  ;;  %v725_v30 = vperm.slane %v1130_v8, 6 }
 0x34d   :  { %810 = vperm.xlu0 %1063, %v756_v11   ;;  %785 = vperm.xlu2 %1061, %v751_v12  }
 0x34e   :  { %v755_v17 = vmul.f32 %v1499_v45, %v723_v52  ;;  %v757_v35 = vmul.f32 %v1453_v46, %v725_v30 }
 0x355   :  { %790 = vperm.xlu2 %1061, %v752_v27  }
 0x35d   :  { %795 = vperm.xlu2 %1061, %v753_v14  }
 0x360   :  { %v714_v48 = vpop.xlane.xlu1 %713 }
 0x361   :  { %1131 = vrcp.f32 %v714_v48  ;;  %v779_v48 = vld [vmem:[#allocation7 + $0x60] sm:$0xff] }
 0x365   :  { %800 = vperm.xlu2 %1061, %v754_v16   ;;  %v776_v16 = vld [vmem:[#allocation7 + $0x48] sm:$0xff] }
 0x367   :  { %v1132_v39 = vpop.eup %1131 }
 0x368   :  { %v731_v18 = vperm.slane %v1132_v39, 4  ;;  %v728_v33 = vperm.slane %v1132_v39, 1  ;;  %v733_v21 = vperm.slane %v1132_v39, 6  ;;  %v727_v22 = vperm.slane %v1132_v39, 0 }
 0x369   :  { %v729_v24 = vperm.slane %v1132_v39, 2  ;;  %v730_v25 = vperm.slane %v1132_v39, 3  ;;  %v732_v46 = vperm.slane %v1132_v39, 5 }
 0x36a   :  { %v763_v19 = vmul.f32 %v1483_v34, %v731_v18  ;;  %v760_v20 = vmul.f32 %v1514_v2, %v728_v33  ;;  %v765_v62 = vmul.f32 %v1521_v6, %v733_v21  ;;  %v759_v23 = vmul.f32 %v1509_v61, %v727_v22  ;;  %v778_v33 = vld [vmem:[#allocation7 + $0x58] sm:$0xff] }
 0x36b   :  { %v734_v34 = vperm.slane %v1132_v39, 7  ;;  %v761_v45 = vmul.f32 %v1481_v32, %v729_v24  ;;  %v762_v26 = vmul.f32 %v1518_v5, %v730_v25  ;;  %v764_v6 = vmul.f32 %v1492_v37, %v732_v46  ;;  %v767_v32 = vld [vmem:[#allocation7] sm:$0xff] }
 0x36c   :  { %845 = vperm.xlu0 %1063, %v763_v19   ;;  %830 = vperm.xlu1 %1062, %v760_v20   ;;  %v726_v61 = vperm.slane %v1130_v8, 7 }
 0x36d   :  { %805 = vperm.xlu2 %1061, %v755_v17   ;;  %v766_v2 = vmul.f32 %v1494_v40, %v734_v34 }
 0x36e   :  { %v758_v53 = vmul.f32 %v1450_v13, %v726_v61 }
 0x374   :  { %815 = vperm.xlu0 %1063, %v757_v35   ;;  %855 = vperm.xlu1 %1062, %v765_v62  }
 0x375   :  { %825 = vperm.xlu2 %1061, %v759_v23  }
 0x37c   :  { %860 = vperm.xlu0 %1063, %v766_v2  }
 0x37d   :  { %835 = vperm.xlu2 %1061, %v761_v45  }
 0x385   :  { %840 = vperm.xlu2 %1061, %v762_v26  }
 0x38d   :  { %850 = vperm.xlu2 %1061, %v764_v6  }
 0x395   :  { %820 = vperm.xlu2 %1061, %v758_v53  }
 0x3a7   :  { %v786_v28 = vpop.permute.xlu2 %785 }
 0x3a8   :  { %v863_v31 = vmul.f32 %v786_v28, %v767_v32 }
 0x3aa   :  { %v879_v5 = vsel %vm77_vm0, %v863_v31, 0.0  ;;  %v781_v31 = vld [vmem:[#allocation7 + $0x70] sm:$0xff] }
 0x3ab   :  { %v880_v49 = vrot.slane %v879_v5, 4 }
 0x3ad   :  { %v881_v59 = vadd.f32 %v880_v49, %v879_v5 }
 0x3af   :  { %v791_v29 = vpop.permute.xlu2 %790  ;;  %v882_v12 = vrot.slane %v881_v59, 2 }
 0x3b0   :  { %v864_v36 = vmul.f32 %v791_v29, %v768_v60  ;;  %v773_v60 = vld [vmem:[#allocation7 + $0x30] sm:$0xff] }
 0x3b1   :  { %v883_v19 = vadd.f32 %v882_v12, %v881_v59 }
 0x3b2   :  { %v886_v37 = vsel %vm77_vm0, %v864_v36, 0.0 }
 0x3b3   :  { %v887_v50 = vrot.slane %v886_v37, 4  ;;  %v884_v36 = vrot.slane %v883_v19, 1 }
 0x3b5   :  { %v888_v4 = vadd.f32 %v887_v50, %v886_v37 }
 0x3b7   :  { %v796_v43 = vpop.permute.xlu2 %795  ;;  %v889_v0 = vrot.slane %v888_v4, 2 }
 0x3b8   :  { %v865_v13 = vmul.f32 %v796_v43, %v769_v42 }
 0x3b9   :  { %v890_v23 = vadd.f32 %v889_v0, %v888_v4  ;;  %v885_v0 = vadd.f32 %v884_v36, %v883_v19 }
 0x3ba   :  { %v893_v38 = vsel %vm77_vm0, %v865_v13, 0.0 }
 0x3bb   :  { %v894_v10 = vrot.slane %v893_v38, 4  ;;  %v891_v37 = vrot.slane %v890_v23, 1 }
 0x3bd   :  { %v895_v39 = vadd.f32 %v894_v10, %v893_v38 }
 0x3bf   :  { %v801_v40 = vpop.permute.xlu2 %800  ;;  %v811_v63 = vpop.permute.xlu0 %810  ;;  %v896_v45 = vrot.slane %v895_v39, 2 }
 0x3c0   :  { %v866_v7 = vmul.f32 %v801_v40, %v770_v47  ;;  %v868_v27 = vmul.f32 %v811_v63, %v772_v54 }
 0x3c2   :  { %v900_v14 = vsel %vm77_vm0, %v866_v7, 0.0  ;;  %v914_v30 = vsel %vm77_vm0, %v868_v27, 0.0 }
 0x3c3   :  { %v901_v21 = vrot.slane %v900_v14, 4  ;;  %v915_v6 = vrot.slane %v914_v30, 4 }
 0x3c5   :  { %v902_v29 = vadd.f32 %v901_v21, %v900_v14  ;;  %v916_v49 = vadd.f32 %v915_v6, %v914_v30 }
 0x3c7   :  { %v806_v51 = vpop.permute.xlu2 %805  ;;  %v917_v14 = vrot.slane %v916_v49, 2 }
 0x3c8   :  { %v867_v11 = vmul.f32 %v806_v51, %v771_v1 }
 0x3ca   :  { %v907_v52 = vsel %vm77_vm0, %v867_v11, 0.0 }
 0x3cb   :  { %v908_v34 = vrot.slane %v907_v52, 4 }
 0x3cd   :  { %v909_v40 = vadd.f32 %v908_v34, %v907_v52 }
 0x3cf   :  { %v826_v41 = vpop.permute.xlu2 %825  ;;  %v910_v1 = vrot.slane %v909_v40, 2 }
 0x3d0   :  { %v871_v44 = vmul.f32 %v826_v41, %v775_v57  ;;  %v780_v41 = vld [vmem:[#allocation7 + $0x68] sm:$0xff] }
 0x3d2   :  { %v935_v56 = vsel %vm77_vm0, %v871_v44, 0.0  ;;  %v1583_v44 = vadd.f32 %v896_v45, %v895_v39 }
 0x3d3   :  { %v936_v8 = vrot.slane %v935_v56, 4 }
 0x3d5   :  { %v937_v15 = vadd.f32 %v936_v8, %v935_v56  ;;  %v903_v56 = vrot.slane %v902_v29, 2 }
 0x3d7   :  { %v836_v55 = vpop.permute.xlu2 %835  ;;  %v938_v24 = vrot.slane %v937_v15, 2 }
 0x3d8   :  { %v873_v9 = vmul.f32 %v836_v55, %v777_v58 }
 0x3d9   :  { %v939_v51 = vadd.f32 %v938_v24, %v937_v15  ;;  %v904_v15 = vadd.f32 %v903_v56, %v902_v29 }
 0x3da   :  { %v949_v3 = vsel %vm77_vm0, %v873_v9, 0.0 }
 0x3db   :  { %v950_v18 = vrot.slane %v949_v3, 4  ;;  %v940_v55 = vrot.slane %v939_v51, 1  ;;  %v905_v6 = vrot.slane %v904_v15, 1 }
 0x3dd   :  { %v951_v25 = vadd.f32 %v950_v18, %v949_v3 }
 0x3de   :  { %v846_v20 = vpop.permute.xlu0 %845  ;;  %v831_v17 = vpop.permute.xlu1 %830 }
 0x3df   :  { %v875_v22 = vmul.f32 %v846_v20, %v779_v48  ;;  %v872_v35 = vmul.f32 %v831_v17, %v776_v16  ;;  %v841_v62 = vpop.permute.xlu2 %840  ;;  %v952_v57 = vrot.slane %v951_v25, 2  ;;  %v911_v16 = vadd.f32 %v910_v1, %v909_v40 }
 0x3e0   :  { %v874_v2 = vmul.f32 %v841_v62, %v778_v33  ;;  %v782_v33 = vld [vmem:[#allocation7 + $0x78] sm:$0xff]  ;;  %v892_v20 = vadd.f32 %v891_v37, %v890_v23  ;;  %v941_v62 = vadd.f32 %v940_v55, %v939_v51 }
 0x3e1   :  { %v963_v26 = vsel %vm77_vm0, %v875_v22, 0.0  ;;  %v942_v46 = vsel %vm77_vm0, %v872_v35, 0.0  ;;  %v953_v7 = vadd.f32 %v952_v57, %v951_v25  ;;  %v774_v22 = vld [vmem:[#allocation7 + $0x38] sm:$0xff]  ;;  %v898_v35 = vrot.slane %v1583_v44, 1 }
 0x3e2   :  { %v964_v61 = vrot.slane %v963_v26, 4  ;;  %v943_v53 = vrot.slane %v942_v46, 4  ;;  %v956_v28 = vsel %vm77_vm0, %v874_v2, 0.0  ;;  %v918_v2 = vadd.f32 %v917_v14, %v916_v49 }
 0x3e3   :  { %v957_v43 = vrot.slane %v956_v28, 4  ;;  %v954_v17 = vrot.slane %v953_v7, 1  ;;  %v899_v37 = vadd.f32 %v898_v35, %v1583_v44 }
 0x3e4   :  { %v944_v32 = vadd.f32 %v943_v53, %v942_v46  ;;  %v965_v5 = vadd.f32 %v964_v61, %v963_v26  ;;  %v912_v61 = vrot.slane %v911_v16, 1 }
 0x3e5   :  { %v958_v42 = vadd.f32 %v957_v43, %v956_v28  ;;  %v955_v28 = vadd.f32 %v954_v17, %v953_v7 }
 0x3e6   :  { %v945_v13 = vrot.slane %v944_v32, 2  ;;  %v816_v50 = vpop.permute.xlu0 %815  ;;  %v856_v47 = vpop.permute.xlu1 %855  ;;  %v966_v8 = vrot.slane %v965_v5, 2 }
 0x3e7   :  { %v959_v58 = vrot.slane %v958_v42, 2  ;;  %v869_v59 = vmul.f32 %v816_v50, %v773_v60  ;;  %v877_v38 = vmul.f32 %v856_v47, %v781_v31  ;;  %v851_v63 = vpop.permute.xlu2 %850  ;;  %v906_v50 = vadd.f32 %v905_v6, %v904_v15 }
 0x3e8   :  { %v946_v4 = vadd.f32 %v945_v13, %v944_v32  ;;  %v876_v54 = vmul.f32 %v851_v63, %v780_v41  ;;  %v967_v30 = vadd.f32 %v966_v8, %v965_v5  ;;  %v1007_v41 = vsel %vm501_vm1, %v892_v20, %v885_v0 }
 0x3e9   :  { %v921_v9 = vsel %vm77_vm0, %v869_v59, 0.0  ;;  %v977_v10 = vsel %vm77_vm0, %v877_v38, 0.0  ;;  %v960_v12 = vadd.f32 %v959_v58, %v958_v42  ;;  %v919_v13 = vrot.slane %v918_v2, 1 }
 0x3ea   :  { %v947_v11 = vrot.slane %v946_v4, 1  ;;  %v922_v3 = vrot.slane %v921_v9, 4  ;;  %v978_v27 = vrot.slane %v977_v10, 4  ;;  %v970_v48 = vsel %vm77_vm0, %v876_v54, 0.0 }
 0x3eb   :  { %v971_v21 = vrot.slane %v970_v48, 4  ;;  %v961_v34 = vrot.slane %v960_v12, 1  ;;  %v968_v29 = vrot.slane %v967_v30, 1  ;;  %v913_v58 = vadd.f32 %v912_v61, %v911_v16 }
 0x3ec   :  { %v948_v39 = vadd.f32 %v947_v11, %v946_v4  ;;  %v923_v52 = vadd.f32 %v922_v3, %v921_v9  ;;  %v979_v18 = vadd.f32 %v978_v27, %v977_v10  ;;  %v1008_v7 = vsel %vm503_vm2, %v899_v37, %v1007_v41 }
 0x3ed   :  { %v972_v25 = vadd.f32 %v971_v21, %v970_v48  ;;  %v962_v32 = vadd.f32 %v961_v34, %v960_v12  ;;  %v969_v1 = vadd.f32 %v968_v29, %v967_v30  ;;  %v1009_v9 = vsel %vm505_vm3, %v906_v50, %v1008_v7 }
 0x3ee   :  { %v924_v24 = vrot.slane %v923_v52, 2  ;;  %v861_v19 = vpop.permute.xlu0 %860  ;;  %v980_v45 = vrot.slane %v979_v18, 2  ;;  %v1014_v53 = vsel %vm501_vm1, %v948_v39, %v941_v62  ;;  %v1010_v11 = vsel %vm507_vm4, %v913_v58, %v1009_v9 }
 0x3ef   :  { %v878_v26 = vmul.f32 %v861_v19, %v782_v33  ;;  %v821_v46 = vpop.permute.xlu2 %820  ;;  %v973_v43 = vrot.slane %v972_v25, 2  ;;  %v1015_v36 = vsel %vm503_vm2, %v955_v28, %v1014_v53  ;;  %v920_v0 = vadd.f32 %v919_v13, %v918_v2 }
 0x3f0   :  { %v870_v23 = vmul.f32 %v821_v46, %v774_v22  ;;  %v925_v51 = vadd.f32 %v924_v24, %v923_v52  ;;  %v981_v57 = vadd.f32 %v980_v45, %v979_v18  ;;  %v1016_v59 = vsel %vm505_vm3, %v962_v32, %v1015_v36 }
 0x3f1   :  { %v984_v40 = vsel %vm77_vm0, %v878_v26, 0.0  ;;  %v974_v5 = vadd.f32 %v973_v43, %v972_v25  ;;  %v1017_v44 = vsel %vm507_vm4, %v969_v1, %v1016_v59  ;;  %v1011_v39 = vsel %vm509_vm5, %v920_v0, %v1010_v11 }
 0x3f2   :  { %v985_v60 = vrot.slane %v984_v40, 4  ;;  %v928_v31 = vsel %vm77_vm0, %v870_v23, 0.0  ;;  %v926_v38 = vrot.slane %v925_v51, 1  ;;  %v982_v55 = vrot.slane %v981_v57, 1 }
 0x3f3   :  { %v929_v42 = vrot.slane %v928_v31, 4  ;;  %v975_v47 = vrot.slane %v974_v5, 1 }
 0x3f4   :  { %v986_v49 = vadd.f32 %v985_v60, %v984_v40  ;;  %v927_v12 = vadd.f32 %v926_v38, %v925_v51  ;;  %v983_v14 = vadd.f32 %v982_v55, %v981_v57 }
 0x3f5   :  { %v930_v56 = vadd.f32 %v929_v42, %v928_v31  ;;  %v976_v4 = vadd.f32 %v975_v47, %v974_v5 }
 0x3f6   :  { %v987_v63 = vrot.slane %v986_v49, 2  ;;  %v1012_v18 = vsel %vm511_vm6, %v927_v12, %v1011_v39 }
 0x3f7   :  { %v931_v54 = vrot.slane %v930_v56, 2  ;;  %v1018_v3 = vsel %vm509_vm5, %v976_v4, %v1017_v44 }
 0x3f8   :  { %v988_v8 = vadd.f32 %v987_v63, %v986_v49  ;;  %v1019_v52 = vsel %vm511_vm6, %v983_v14, %v1018_v3 }
 0x3f9   :  { %v932_v10 = vadd.f32 %v931_v54, %v930_v56 }
 0x3fa   :  { %v989_v27 = vrot.slane %v988_v8, 1 }
 0x3fb   :  { %v933_v15 = vrot.slane %v932_v10, 1 }
 0x3fc   :  { %v990_v48 = vadd.f32 %v989_v27, %v988_v8 }
 0x3fd   :  { %v934_v16 = vadd.f32 %v933_v15, %v932_v10 }
 0x3fe   :  { %v1020_v33 = vsel %vm513_vm7, %v990_v48, %v1019_v52 }
 0x3ff   :  { %v1013_v20 = vsel %vm513_vm7, %v934_v16, %v1012_v18  ;;  %1024 = vst.msk [vmem:[#allocation8 + $0x8] sm:$0xff] %vm77_vm0, %v1020_v33 }
 0x400   :  { %1023 = vst.msk [vmem:[#allocation8] sm:$0xff] %vm77_vm0, %v1013_v20 }
 0x401   :  { %1037 = dma.vmem_to_hbm [thread:$0]  %s1030_s19, 256, %s1032_s22, [#allocation4], %s1236_s29, %s1236_s29, %s1237_s30  }
 0x402   :  { %1233 = dma.done.wait [#allocation4], 256  }
 0x403   :  { %1234 = vsyncadd [#allocation4], 4294967040 }
 0x404   :  { %1042 = vsyncpa [#allocation3], 1 }
 0x405   :  { %1043 = vsyncpa [#allocation6], 1 }
 0x406   :  { %1044 = vsyncpa [#allocation4], 1 }

</bundles_post_ra>
